<compile_context>
chip_gen: v7x
topology: tpu7x:2x2x1
jax: 0.10.0
libtpu: 0.0.40
codegen_flags: <defaults>
</compile_context>

<pallas_src>
import functools

import jax
import jax.numpy as jnp
from jax import lax
from jax.experimental import pallas as pl
from jax.experimental.pallas import tpu as pltpu


def _projkmeans_kernel(x_ref, w_ref, c_ref, ncsq_ref,
                       xp_ref, xr_ref, lab_ref, mp_ref, mr_ref,
                       *, per_m_blocks):
    # x_ref   : (TB, D)      batch tile of X
    # w_ref   : (D, Dp)      projection weight of sub-space m (leading M dim squeezed)
    # c_ref   : (K, D)       kmeans centroids
    # ncsq_ref: (1, K)       -0.5 * ||c_k||^2, precomputed in the wrapper
    # xp_ref  : per_m_blocks -> (TB, D) block for sub-space m; else (TB, M*D) slab
    # xr_ref  : same layout as xp_ref
    # lab_ref : (TB, M)      int32 centroid index (M-resident slab, mask-accumulated)
    # mp_ref  : (TB, D)      sum_m X_p  (accumulated over the "arbitrary" M grid axis)
    # mr_ref  : (TB, D)      sum_m X_r  (accumulated over the "arbitrary" M grid axis)
    m = pl.program_id(1)
    D = x_ref.shape[1]
    K = c_ref.shape[0]
    M = lab_ref.shape[1]

    x = x_ref[...]                      # (TB, D)
    w = w_ref[...]                      # (D, Dp)
    c = c_ref[...]                      # (K, D)

    # --- Projection_share: X_p[:, m, :] = X @ W_m @ W_m^T (two MXU matmuls) --------
    a = jnp.dot(x, w, preferred_element_type=jnp.float32)                  # (TB, Dp)
    xp = lax.dot_general(a, w, (((1,), (1,)), ((), ())),
                         preferred_element_type=jnp.float32)               # (TB, D)

    # --- KmeansNN: argmin_k ||xp - c_k||^2 == argmax_k (xp.c_k - 0.5||c_k||^2) -----
    score = lax.dot_general(xp, c, (((1,), (1,)), ((), ())),
                            preferred_element_type=jnp.float32)            # (TB, K)
    score = score + ncsq_ref[...]                                          # (TB, K)

    # first-maximal-index tie-break (matches torch.max) via iota/min
    iota_k = lax.broadcasted_iota(jnp.int32, score.shape, 1)               # (TB, K)
    max_val = jnp.max(score, axis=-1, keepdims=True)                       # (TB, 1)
    label = jnp.min(jnp.where(score == max_val, iota_k, K),
                    axis=-1, keepdims=True)                                # (TB, 1)
    one_hot = (iota_k == label).astype(jnp.float32)                        # (TB, K)

    # X_r = one_hot @ centers (== center[label])  (MXU)
    xr = jnp.dot(one_hot, c, preferred_element_type=jnp.float32)           # (TB, D)

    # --- X_p / X_r stores ----------------------------------------------------------
    if per_m_blocks:
        # per-m output block: whole-block store, written back each m step
        xp_ref[...] = xp.astype(xp_ref.dtype)
        xr_ref[...] = xr.astype(xr_ref.dtype)
    else:
        # lane-unaligned D: M-resident slab, static column slice for sub-space m
        for mm in range(M):
            @pl.when(m == mm)
            def _(mm=mm):
                xp_ref[:, mm * D:(mm + 1) * D] = xp.astype(xp_ref.dtype)
                xr_ref[:, mm * D:(mm + 1) * D] = xr.astype(xr_ref.dtype)

    # labels: mask-accumulate into the tiny (TB, M) resident slab (no when-chain)
    col = lax.broadcasted_iota(jnp.int32, lab_ref.shape, 1)                # (TB, M)
    lab_now = jnp.where(col == m, label, 0)                                # (TB, M)

    # --- Projection_share.merge: accumulate over the last ("arbitrary") grid axis ---
    @pl.when(m == 0)
    def _():
        lab_ref[...] = lab_now
        mp_ref[...] = xp.astype(mp_ref.dtype)
        mr_ref[...] = xr.astype(mr_ref.dtype)

    @pl.when(m > 0)
    def _():
        lab_ref[...] += lab_now
        mp_ref[...] += xp.astype(mp_ref.dtype)
        mr_ref[...] += xr.astype(mr_ref.dtype)


def proj_kmeans_forward(X, weight, center, T, *, tb=None):
    """Pallas implementation of ProjKmeans.forward.

    Returns (X_r, X_p, merge(X_r), merge(X_p), centroid, label) exactly like the
    PyTorch module: X_r / X_p are (B, M, D), merges are (B, D), label is (B, M, 1).
    The forward value is independent of T (softmax / sqrt are monotone for T > 0).
    """
    del T  # forward labels / hard one-hot do not depend on the temperature
    B, D = X.shape
    M, D_in, Dp = weight.shape
    assert D_in == D
    K = center.shape[0]

    X = X.astype(jnp.float32)
    weight = weight.astype(jnp.float32)
    center = center.astype(jnp.float32)
    neg_half_csq = (-0.5 * jnp.sum(center * center, axis=-1))[None, :]     # (1, K)

    # D lane-aligned -> per-m (tb, D) output blocks; otherwise M-resident slab.
    per_m_blocks = (D % 128 == 0) or (M == 1)

    # --- per-generation tile / VMEM sizing ------------------------------------------
    try:
        kind = jax.devices()[0].device_kind.lower()
    except Exception:
        kind = ""
    if ("v2" in kind) or ("v3" in kind):
        vmem_limit, default_tb, want_two_tiles = None, 256, False           # tiny VMEM
    elif ("v4" in kind) or ("v5" in kind) or ("v6" in kind):
        vmem_limit, default_tb, want_two_tiles = 100 * 2**20, 512, False    # 128 MiB VMEM
    else:
        # v7x (64 MiB VMEM, 2 TensorCores per chip) or unknown: be conservative.
        vmem_limit, default_tb, want_two_tiles = 48 * 2**20, 256, True

    tb = default_tb if tb is None else tb
    tb = max(1, min(tb, B))
    if want_two_tiles and B >= 16:
        # keep >= 2 batch tiles so the "parallel" axis shards across both TensorCores
        tb = min(tb, max(8, (((B + 1) // 2) // 8) * 8))
    if tb >= 8:
        tb = (tb // 8) * 8                      # sublane alignment

    def _vmem_bytes(tb_):
        # rough double-buffered per-stage footprint (f32 words)
        slab_cols = D if per_m_blocks else M * D
        words = (tb_ * D                        # X tile
                 + D * Dp + K * D + K           # W_m, centroids, -0.5||c||^2
                 + 2 * tb_ * slab_cols          # X_p / X_r output blocks
                 + tb_ * M                      # labels
                 + 2 * tb_ * D)                 # merge accumulators
        return 2 * 4 * words

    budget = int(0.6 * (vmem_limit if vmem_limit is not None else 16 * 2**20))
    while tb > 8 and _vmem_bytes(tb) > budget:
        tb = max(8, ((tb // 2) // 8) * 8)

    nb = pl.cdiv(B, tb)                         # ragged last tile is row-independent

    if per_m_blocks:
        xp_spec = pl.BlockSpec((tb, D), lambda b, m: (b, m))      # per-m block
        xr_spec = pl.BlockSpec((tb, D), lambda b, m: (b, m))
    else:
        xp_spec = pl.BlockSpec((tb, M * D), lambda b, m: (b, 0))  # M-resident slab
        xr_spec = pl.BlockSpec((tb, M * D), lambda b, m: (b, 0))

    kernel = functools.partial(_projkmeans_kernel, per_m_blocks=per_m_blocks)

    cp_kwargs = dict(dimension_semantics=("parallel", "arbitrary"))
    if vmem_limit is not None:
        cp_kwargs["vmem_limit_bytes"] = vmem_limit

    xp_flat, xr_flat, lab, merged_p, merged_r = pl.pallas_call(
        kernel,
        out_shape=(
            jax.ShapeDtypeStruct((B, M * D), jnp.float32),   # X_p, lane-dense slab
            jax.ShapeDtypeStruct((B, M * D), jnp.float32),   # X_r, lane-dense slab
            jax.ShapeDtypeStruct((B, M), jnp.int32),         # labels
            jax.ShapeDtypeStruct((B, D), jnp.float32),       # merge(X_p)
            jax.ShapeDtypeStruct((B, D), jnp.float32),       # merge(X_r)
        ),
        grid_spec=pltpu.PrefetchScalarGridSpec(
            num_scalar_prefetch=0,
            grid=(nb, M),                                    # B tiles outer, M inner
            in_specs=[
                pl.BlockSpec((tb, D), lambda b, m: (b, 0)),          # X tile (reused over m)
                pl.BlockSpec((None, D, Dp), lambda b, m: (m, 0, 0)), # W_m (M dim squeezed)
                pl.BlockSpec((K, D), lambda b, m: (0, 0)),           # centroids
                pl.BlockSpec((1, K), lambda b, m: (0, 0)),           # -0.5*||c||^2
            ],
            out_specs=(
                xp_spec, xr_spec,
                pl.BlockSpec((tb, M), lambda b, m: (b, 0)),          # labels (M-resident)
                pl.BlockSpec((tb, D), lambda b, m: (b, 0)),          # merge(X_p) accumulator
                pl.BlockSpec((tb, D), lambda b, m: (b, 0)),          # merge(X_r) accumulator
            ),
        ),
        compiler_params=pltpu.CompilerParams(**cp_kwargs),
    )(X, weight, center, neg_half_csq)

    # Free reshapes (row-major contiguous) back to the PyTorch layout — no HBM transpose.
    X_p = xp_flat.reshape(B, M, D)
    X_r = xr_flat.reshape(B, M, D)
    label = lab.reshape(B, M, 1)

    return X_r, X_p, merged_r, merged_p, center, label


def _reference(X, weight, center, T):
    # pure-JAX reference of the PyTorch forward (original sqrt/T formulation)
    a = jnp.einsum("mij,bi->mjb", weight, X)             # tensordot(weight, X, [[1],[1]])
    b = jnp.einsum("mij,mjb->mib", weight, a)            # bmm(weight, a)
    X_p = jnp.transpose(b, (2, 0, 1))                    # (B, M, D)
    dist = jnp.sqrt(jnp.sum((X_p[:, :, None, :] - center[None, None, :, :]) ** 2, axis=-1))
    logits = -dist / T                                   # (B, M, K)
    label = jnp.argmax(logits, axis=-1)                  # (B, M)
    X_r = center[label]                                  # (B, M, D)
    return X_r, X_p, X_r.sum(1), X_p.sum(1), center, label[..., None]


def _check(outs, refs, tag):
    X_r, X_p, m_r, m_p, _, lab = outs
    rX_r, rX_p, rm_r, rm_p, _, rlab = refs
    assert jnp.allclose(X_p, rX_p, atol=1e-5), f"{tag}: X_p mismatch"
    assert jnp.allclose(X_r, rX_r, atol=1e-5), f"{tag}: X_r mismatch"
    assert jnp.allclose(m_p, rm_p, atol=1e-5), f"{tag}: merge(X_p) mismatch"
    assert jnp.allclose(m_r, rm_r, atol=1e-5), f"{tag}: merge(X_r) mismatch"
    assert jnp.array_equal(lab.astype(jnp.int32), rlab.astype(jnp.int32)), f"{tag}: label mismatch"


if __name__ == "__main__":
    # Case 1: ProjKmeans(M=4, K=8, D=32, T=0.5), B=8 — lane-unaligned D (slab path).
    M, K, D, T = 4, 8, 32, 0.5
    B = 8
    Dp = D // M
    kx, kw, kc = jax.random.split(jax.random.PRNGKey(0), 3)
    X = jax.random.normal(kx, (B, D), dtype=jnp.float32)
    # nn.init.normal_(std=0.01) for both parameters
    weight = 0.01 * jax.random.normal(kw, (M, D, Dp), dtype=jnp.float32)
    center = 0.01 * jax.random.normal(kc, (K, D), dtype=jnp.float32)
    outs = jax.block_until_ready(proj_kmeans_forward(X, weight, center, T))
    _check(outs, _reference(X, weight, center, T), "case1")

    # Case 2: lane-aligned D=256 (per-m output-block path) with multiple batch tiles.
    M2, K2, D2, T2 = 2, 8, 256, 0.5
    B2 = 16
    Dp2 = D2 // M2
    k2x, k2w, k2c = jax.random.split(jax.random.PRNGKey(1), 3)
    X2 = jax.random.normal(k2x, (B2, D2), dtype=jnp.float32)
    weight2 = 0.01 * jax.random.normal(k2w, (M2, D2, Dp2), dtype=jnp.float32)
    center2 = 0.01 * jax.random.normal(k2c, (K2, D2), dtype=jnp.float32)
    outs2 = jax.block_until_ready(proj_kmeans_forward(X2, weight2, center2, T2))
    _check(outs2, _reference(X2, weight2, center2, T2), "case2")

    print("KERNEL_OK")
</pallas_src>

<mosaic_0001>
module attributes {stable_mosaic.version = 11 : i64} {
  func.func @_projkmeans_kernel(%arg0: i32, %arg1: i32, %arg2: memref<8x32xf32, #tpu.memory_space<vmem>>, %arg3: memref<1x32x8xf32, #tpu.memory_space<vmem>>, %arg4: memref<8x32xf32, #tpu.memory_space<vmem>>, %arg5: memref<1x8xf32, #tpu.memory_space<vmem>>, %arg6: memref<8x128xf32, #tpu.memory_space<vmem>>, %arg7: memref<8x128xf32, #tpu.memory_space<vmem>>, %arg8: memref<8x4xi32, #tpu.memory_space<vmem>>, %arg9: memref<8x32xf32, #tpu.memory_space<vmem>>, %arg10: memref<8x32xf32, #tpu.memory_space<vmem>>) attributes {dimension_semantics = [#tpu.dimension_semantics<parallel>, #tpu.dimension_semantics<arbitrary>], iteration_bounds = array<i64: 1, 4>, scalar_prefetch = 0 : i64, scratch_operands = 0 : i64, tpu.core_type = #tpu.core_type<tc>, window_params = [{transform_indices = @transform_0, window_bounds = array<i64: 8, 32>}, {transform_indices = @transform_1, window_bounds = array<i64: 1, 32, 8>}, {pipeline_mode = #tpu.pipeline_mode<synchronous>, transform_indices = @transform_2, window_bounds = array<i64: 8, 32>}, {pipeline_mode = #tpu.pipeline_mode<synchronous>, transform_indices = @transform_3, window_bounds = array<i64: 1, 8>}, {transform_indices = @transform_4, window_bounds = array<i64: 8, 128>}, {transform_indices = @transform_5, window_bounds = array<i64: 8, 128>}, {transform_indices = @transform_6, window_bounds = array<i64: 8, 4>}, {transform_indices = @transform_7, window_bounds = array<i64: 8, 32>}, {transform_indices = @transform_8, window_bounds = array<i64: 8, 32>}]} {
    %c0 = arith.constant 0 : index
    %c0_0 = arith.constant 0 : index
    %0 = vector.load %arg2[%c0, %c0_0] : memref<8x32xf32, #tpu.memory_space<vmem>>, vector<8x32xf32>
    %c0_1 = arith.constant 0 : index
    %c0_2 = arith.constant 0 : index
    %c0_3 = arith.constant 0 : index
    %1 = vector.load %arg3[%c0_1, %c0_2, %c0_3] : memref<1x32x8xf32, #tpu.memory_space<vmem>>, vector<1x32x8xf32>
    %2 = vector.shape_cast %1 : vector<1x32x8xf32> to vector<32x8xf32>
    %c0_4 = arith.constant 0 : index
    %c0_5 = arith.constant 0 : index
    %3 = vector.load %arg4[%c0_4, %c0_5] : memref<8x32xf32, #tpu.memory_space<vmem>>, vector<8x32xf32>
    %cst = arith.constant dense<0.000000e+00> : vector<8x8xf32>
    %4 = tpu.matmul %0, %2, %cst {dimension_numbers = #tpu.dot_dimension_numbers<[1], [0], [0], [1], [0, 0, 1, 1], [], []>} : vector<8x32xf32>, vector<32x8xf32>, vector<8x8xf32> -> vector<8x8xf32>
    %cst_6 = arith.constant dense<0.000000e+00> : vector<8x32xf32>
    %5 = tpu.matmul %4, %2, %cst_6 {dimension_numbers = #tpu.dot_dimension_numbers<[1], [1], [0], [0], [0, 0, 1, 0], [], []>} : vector<8x8xf32>, vector<32x8xf32>, vector<8x32xf32> -> vector<8x32xf32>
    %cst_7 = arith.constant dense<0.000000e+00> : vector<8x8xf32>
    %6 = tpu.matmul %5, %3, %cst_7 {dimension_numbers = #tpu.dot_dimension_numbers<[1], [1], [0], [0], [0, 0, 1, 0], [], []>} : vector<8x32xf32>, vector<8x32xf32>, vector<8x8xf32> -> vector<8x8xf32>
    %c0_8 = arith.constant 0 : index
    %c0_9 = arith.constant 0 : index
    %7 = vector.load %arg5[%c0_8, %c0_9] : memref<1x8xf32, #tpu.memory_space<vmem>>, vector<1x8xf32>
    %8 = vector.broadcast %7 : vector<1x8xf32> to vector<8x8xf32>
    %9 = arith.addf %6, %8 : vector<8x8xf32>
    %10 = tpu.iota {dimensions = array<i32: 1>} : vector<8x8xi32>
    %cst_10 = arith.constant dense<0xFF800000> : vector<8xf32>
    %11 = vector.multi_reduction <maximumf>, %9, %cst_10 [1] : vector<8x8xf32> to vector<8xf32>
    %12 = vector.shape_cast %11 : vector<8xf32> to vector<8x1xf32>
    %13 = vector.broadcast %12 : vector<8x1xf32> to vector<8x8xf32>
    %14 = arith.cmpf oeq, %9, %13 : vector<8x8xf32>
    %c8_i32 = arith.constant 8 : i32
    %15 = vector.broadcast %c8_i32 : i32 to vector<8x8xi32>
    %16 = arith.select %14, %10, %15 : vector<8x8xi1>, vector<8x8xi32>
    %cst_11 = arith.constant dense<2147483647> : vector<8xi32>
    %17 = vector.multi_reduction <minsi>, %16, %cst_11 [1] : vector<8x8xi32> to vector<8xi32>
    %18 = vector.shape_cast %17 : vector<8xi32> to vector<8x1xi32>
    %19 = vector.broadcast %18 : vector<8x1xi32> to vector<8x8xi32>
    %20 = arith.cmpi eq, %10, %19 : vector<8x8xi32>
    %21 = arith.extui %20 : vector<8x8xi1> to vector<8x8xi32>
    %22 = arith.sitofp %21 : vector<8x8xi32> to vector<8x8xf32>
    %cst_12 = arith.constant dense<0.000000e+00> : vector<8x32xf32>
    %23 = tpu.matmul %22, %3, %cst_12 {dimension_numbers = #tpu.dot_dimension_numbers<[1], [0], [0], [1], [0, 0, 1, 1], [], []>} : vector<8x8xf32>, vector<8x32xf32>, vector<8x32xf32> -> vector<8x32xf32>
    %c0_i32 = arith.constant 0 : i32
    %24 = arith.cmpi eq, %arg1, %c0_i32 : i32
    %25 = arith.extui %24 : i1 to i32
    %c0_i32_13 = arith.constant 0 : i32
    %26 = arith.cmpi ne, %25, %c0_i32_13 : i32
    scf.if %26 {
      %c0_22 = arith.constant 0 : index
      %c0_23 = arith.constant 0 : index
      %49 = vector.load %arg6[%c0_22, %c0_23] : memref<8x128xf32, #tpu.memory_space<vmem>>, vector<8x32xf32>
      tpu.vector_store %arg6[%c0_22, %c0_23], %5 {strides = array<i32>} : memref<8x128xf32, #tpu.memory_space<vmem>>, vector<8x32xf32>,
      %c0_24 = arith.constant 0 : index
      %c0_25 = arith.constant 0 : index
      %50 = vector.load %arg7[%c0_24, %c0_25] : memref<8x128xf32, #tpu.memory_space<vmem>>, vector<8x32xf32>
      tpu.vector_store %arg7[%c0_24, %c0_25], %23 {strides = array<i32>} : memref<8x128xf32, #tpu.memory_space<vmem>>, vector<8x32xf32>,
    } else {
    }
    %c1_i32 = arith.constant 1 : i32
    %27 = arith.cmpi eq, %arg1, %c1_i32 : i32
    %28 = arith.extui %27 : i1 to i32
    %c0_i32_14 = arith.constant 0 : i32
    %29 = arith.cmpi ne, %28, %c0_i32_14 : i32
    scf.if %29 {
      %c0_22 = arith.constant 0 : index
      %c32 = arith.constant 32 : index
      %49 = vector.load %arg6[%c0_22, %c32] : memref<8x128xf32, #tpu.memory_space<vmem>>, vector<8x32xf32>
      tpu.vector_store %arg6[%c0_22, %c32], %5 {strides = array<i32>} : memref<8x128xf32, #tpu.memory_space<vmem>>, vector<8x32xf32>,
      %c0_23 = arith.constant 0 : index
      %c32_24 = arith.constant 32 : index
      %50 = vector.load %arg7[%c0_23, %c32_24] : memref<8x128xf32, #tpu.memory_space<vmem>>, vector<8x32xf32>
      tpu.vector_store %arg7[%c0_23, %c32_24], %23 {strides = array<i32>} : memref<8x128xf32, #tpu.memory_space<vmem>>, vector<8x32xf32>,
    } else {
    }
    %c2_i32 = arith.constant 2 : i32
    %30 = arith.cmpi eq, %arg1, %c2_i32 : i32
    %31 = arith.extui %30 : i1 to i32
    %c0_i32_15 = arith.constant 0 : i32
    %32 = arith.cmpi ne, %31, %c0_i32_15 : i32
    scf.if %32 {
      %c0_22 = arith.constant 0 : index
      %c64 = arith.constant 64 : index
      %49 = vector.load %arg6[%c0_22, %c64] : memref<8x128xf32, #tpu.memory_space<vmem>>, vector<8x32xf32>
      tpu.vector_store %arg6[%c0_22, %c64], %5 {strides = array<i32>} : memref<8x128xf32, #tpu.memory_space<vmem>>, vector<8x32xf32>,
      %c0_23 = arith.constant 0 : index
      %c64_24 = arith.constant 64 : index
      %50 = vector.load %arg7[%c0_23, %c64_24] : memref<8x128xf32, #tpu.memory_space<vmem>>, vector<8x32xf32>
      tpu.vector_store %arg7[%c0_23, %c64_24], %23 {strides = array<i32>} : memref<8x128xf32, #tpu.memory_space<vmem>>, vector<8x32xf32>,
    } else {
    }
    %c3_i32 = arith.constant 3 : i32
    %33 = arith.cmpi eq, %arg1, %c3_i32 : i32
    %34 = arith.extui %33 : i1 to i32
    %c0_i32_16 = arith.constant 0 : i32
    %35 = arith.cmpi ne, %34, %c0_i32_16 : i32
    scf.if %35 {
      %c0_22 = arith.constant 0 : index
      %c96 = arith.constant 96 : index
      %49 = vector.load %arg6[%c0_22, %c96] : memref<8x128xf32, #tpu.memory_space<vmem>>, vector<8x32xf32>
      tpu.vector_store %arg6[%c0_22, %c96], %5 {strides = array<i32>} : memref<8x128xf32, #tpu.memory_space<vmem>>, vector<8x32xf32>,
      %c0_23 = arith.constant 0 : index
      %c96_24 = arith.constant 96 : index
      %50 = vector.load %arg7[%c0_23, %c96_24] : memref<8x128xf32, #tpu.memory_space<vmem>>, vector<8x32xf32>
      tpu.vector_store %arg7[%c0_23, %c96_24], %23 {strides = array<i32>} : memref<8x128xf32, #tpu.memory_space<vmem>>, vector<8x32xf32>,
    } else {
    }
    %36 = tpu.iota {dimensions = array<i32: 1>} : vector<8x4xi32>
    %37 = vector.broadcast %arg1 : i32 to vector<8x4xi32>
    %38 = arith.cmpi eq, %36, %37 : vector<8x4xi32>
    %c0_i32_17 = arith.constant 0 : i32
    %39 = vector.shape_cast %18 : vector<8x1xi32> to vector<8x1xi32>
    %40 = vector.broadcast %39 : vector<8x1xi32> to vector<8x4xi32>
    %41 = vector.broadcast %c0_i32_17 : i32 to vector<8x4xi32>
    %42 = arith.select %38, %40, %41 : vector<8x4xi1>, vector<8x4xi32>
    %c0_i32_18 = arith.constant 0 : i32
    %43 = arith.cmpi eq, %arg1, %c0_i32_18 : i32
    %44 = arith.extui %43 : i1 to i32
    %c0_i32_19 = arith.constant 0 : i32
    %45 = arith.cmpi ne, %44, %c0_i32_19 : i32
    scf.if %45 {
      %c0_22 = arith.constant 0 : index
      %c0_23 = arith.constant 0 : index
      %49 = vector.load %arg8[%c0_22, %c0_23] : memref<8x4xi32, #tpu.memory_space<vmem>>, vector<8x4xi32>
      tpu.vector_store %arg8[%c0_22, %c0_23], %42 {strides = array<i32>} : memref<8x4xi32, #tpu.memory_space<vmem>>, vector<8x4xi32>,
      %c0_24 = arith.constant 0 : index
      %c0_25 = arith.constant 0 : index
      %50 = vector.load %arg9[%c0_24, %c0_25] : memref<8x32xf32, #tpu.memory_space<vmem>>, vector<8x32xf32>
      tpu.vector_store %arg9[%c0_24, %c0_25], %5 {strides = array<i32>} : memref<8x32xf32, #tpu.memory_space<vmem>>, vector<8x32xf32>,
      %c0_26 = arith.constant 0 : index
      %c0_27 = arith.constant 0 : index
      %51 = vector.load %arg10[%c0_26, %c0_27] : memref<8x32xf32, #tpu.memory_space<vmem>>, vector<8x32xf32>
      tpu.vector_store %arg10[%c0_26, %c0_27], %23 {strides = array<i32>} : memref<8x32xf32, #tpu.memory_space<vmem>>, vector<8x32xf32>,
    } else {
    }
    %c0_i32_20 = arith.constant 0 : i32
    %46 = arith.cmpi sgt, %arg1, %c0_i32_20 : i32
    %47 = arith.extui %46 : i1 to i32
    %c0_i32_21 = arith.constant 0 : i32
    %48 = arith.cmpi ne, %47, %c0_i32_21 : i32
    scf.if %48 {
      %c0_22 = arith.constant 0 : index
      %c0_23 = arith.constant 0 : index
      %49 = vector.load %arg8[%c0_22, %c0_23] : memref<8x4xi32, #tpu.memory_space<vmem>>, vector<8x4xi32>
      %50 = arith.addi %49, %42 : vector<8x4xi32>
      %c0_24 = arith.constant 0 : index
      %c0_25 = arith.constant 0 : index
      %51 = vector.load %arg8[%c0_24, %c0_25] : memref<8x4xi32, #tpu.memory_space<vmem>>, vector<8x4xi32>
      tpu.vector_store %arg8[%c0_24, %c0_25], %50 {strides = array<i32>} : memref<8x4xi32, #tpu.memory_space<vmem>>, vector<8x4xi32>,
      %c0_26 = arith.constant 0 : index
      %c0_27 = arith.constant 0 : index
      %52 = vector.load %arg9[%c0_26, %c0_27] : memref<8x32xf32, #tpu.memory_space<vmem>>, vector<8x32xf32>
      %53 = arith.addf %52, %5 : vector<8x32xf32>
      %c0_28 = arith.constant 0 : index
      %c0_29 = arith.constant 0 : index
      %54 = vector.load %arg9[%c0_28, %c0_29] : memref<8x32xf32, #tpu.memory_space<vmem>>, vector<8x32xf32>
      tpu.vector_store %arg9[%c0_28, %c0_29], %53 {strides = array<i32>} : memref<8x32xf32, #tpu.memory_space<vmem>>, vector<8x32xf32>,
      %c0_30 = arith.constant 0 : index
      %c0_31 = arith.constant 0 : index
      %55 = vector.load %arg10[%c0_30, %c0_31] : memref<8x32xf32, #tpu.memory_space<vmem>>, vector<8x32xf32>
      %56 = arith.addf %55, %23 : vector<8x32xf32>
      %c0_32 = arith.constant 0 : index
      %c0_33 = arith.constant 0 : index
      %57 = vector.load %arg10[%c0_32, %c0_33] : memref<8x32xf32, #tpu.memory_space<vmem>>, vector<8x32xf32>
      tpu.vector_store %arg10[%c0_32, %c0_33], %56 {strides = array<i32>} : memref<8x32xf32, #tpu.memory_space<vmem>>, vector<8x32xf32>,
    } else {
    }
    return
  }
  func.func @transform_0(%arg0: i32, %arg1: i32) -> (i32, i32) {
    %c0_i32 = arith.constant 0 : i32
    %c0_i32_0 = arith.constant 0 : i32
    return %arg0, %c0_i32 : i32, i32
  }
  func.func @transform_1(%arg0: i32, %arg1: i32) -> (i32, i32, i32) {
    %c0_i32 = arith.constant 0 : i32
    %c0_i32_0 = arith.constant 0 : i32
    %c0_i32_1 = arith.constant 0 : i32
    return %arg1, %c0_i32, %c0_i32_0 : i32, i32, i32
  }
  func.func @transform_2(%arg0: i32, %arg1: i32) -> (i32, i32) {
    %c0_i32 = arith.constant 0 : i32
    %c0_i32_0 = arith.constant 0 : i32
    %c0_i32_1 = arith.constant 0 : i32
    return %c0_i32, %c0_i32_0 : i32, i32
  }
  func.func @transform_3(%arg0: i32, %arg1: i32) -> (i32, i32) {
    %c0_i32 = arith.constant 0 : i32
    %c0_i32_0 = arith.constant 0 : i32
    %c0_i32_1 = arith.constant 0 : i32
    return %c0_i32, %c0_i32_0 : i32, i32
  }
  func.func @transform_4(%arg0: i32, %arg1: i32) -> (i32, i32) {
    %c0_i32 = arith.constant 0 : i32
    %c0_i32_0 = arith.constant 0 : i32
    return %arg0, %c0_i32 : i32, i32
  }
  func.func @transform_5(%arg0: i32, %arg1: i32) -> (i32, i32) {
    %c0_i32 = arith.constant 0 : i32
    %c0_i32_0 = arith.constant 0 : i32
    return %arg0, %c0_i32 : i32, i32
  }
  func.func @transform_6(%arg0: i32, %arg1: i32) -> (i32, i32) {
    %c0_i32 = arith.constant 0 : i32
    %c0_i32_0 = arith.constant 0 : i32
    return %arg0, %c0_i32 : i32, i32
  }
  func.func @transform_7(%arg0: i32, %arg1: i32) -> (i32, i32) {
    %c0_i32 = arith.constant 0 : i32
    %c0_i32_0 = arith.constant 0 : i32
    return %arg0, %c0_i32 : i32, i32
  }
  func.func @transform_8(%arg0: i32, %arg1: i32) -> (i32, i32) {
    %c0_i32 = arith.constant 0 : i32
    %c0_i32_0 = arith.constant 0 : i32
    return %arg0, %c0_i32 : i32, i32
  }
}

</mosaic_0001>

<bundles_post_ra>
// kernel: tpu_custom_call.1
= control target key start
LH: loop header
LB: loop body
LE: loop exit
PB: predicated region body
PF: predicated region fallthrough
CT: control target
= control target key end

     0   :  { %14 = vsyncpa [#allocation3], 0  ;;  %s1493_s0 = inlined_call_operand.vmem [shape: f32[8,32], index: 0, kind: input, shape index: {}]   ;;  %s1494_s1 = inlined_call_operand.vmem [shape: f32[4,32,8], index: 1, kind: input, shape index: {}]   ;;  %s1495_s2 = inlined_call_operand.vmem [shape: f32[8,32], index: 2, kind: input, shape index: {}]   ;;  %s1496_s3 = inlined_call_operand.vmem [shape: f32[1,8], index: 3, kind: input, shape index: {}]   ;;  %s1497_s4 = inlined_call_operand.hbm [shape: f32[8,128], index: 4, kind: output, shape index: {0}]   ;;  %s1498_s5 = inlined_call_operand.hbm [shape: f32[8,128], index: 5, kind: output, shape index: {1}]   ;;  %s1499_s6 = inlined_call_operand.vmem [shape: s32[8,4], index: 6, kind: output, shape index: {2}]   ;;  %s1500_s7 = inlined_call_operand.hbm [shape: f32[8,32], index: 7, kind: output, shape index: {3}]   ;;  %s1501_s8 = inlined_call_operand.hbm [shape: f32[8,32], index: 8, kind: output, shape index: {4}]  }
   0x1   :  { %15 = vsyncpa [#allocation5], 0 }
   0x2   :  { %16 = vsyncpa [#allocation8], 0  ;;  %s1292_s27 = smov 0   ;;  %s1294_s28 = smov 0  }
   0x3   :  { %s1296_s29 = smov 0  }
   0x4 LB: > { %s943_s30 = sadd.s32 4294967295, %s1235_s29   ;;  %s31_s9 = sadd.s32 1, %s1231_s28  ;;  %s1235_s29 = sphi %s1296_s29, %s22_s29   ;;  %s1231_s28 = sphi %s1294_s28, %s1506_s28   ;;  %s1227_s27 = sphi %s1292_s27, %s1505_s27  }
   0x5   : > { %p32_p0 = scmp.ge.s32.totalorder %s31_s9, 4  ;;  %p947_p1 = scmp.ge.s32.totalorder %s1235_s29, 1 }
   0x6   : > { %p295_p2 = scmp.lt.s32.totalorder %s1235_s29, 5 }
   0x7   : > { %s1508_s9 = smov (%p32_p0, %s31_s9), 0 }
   0x8   : > { %p296_p3 = pnand %p947_p1, %p295_p2 }
   0x9   : > { %p336_p4 = scmp.lt.s32.totalorder (!%p296_p3), %s1227_s27, 3  ;;  %v1237_v0 = vmov (!%p296_p3), 0.0|0.0   ;;  %vm1238_vm0 = vmmov (!%p296_p3), 0   ;;  %v1239_v1 = vmov (!%p296_p3), 0.0   ;;  %vm425_vm1 = vcmask (!%p296_p3), 64512   ;;  %v345_v9 = vld [vmem:[%s1493_s0] sm:$0xff] (!%p296_p3) }
   0xa   : > { %299 = sbr.rel (%p296_p3) target bundleno = 1802 (0x70a), region = 36  ;;  %1025 = vmatprep.subr.bf16.mxu0 (!%p296_p3), %v1237_v0  ;;  %1001 = vmatprep.mubr.msk.f32.mxu0 (!%p296_p3), %vm1238_vm0, %v1239_v1  ;;  %vm1324_vm2 = vmpackc.low (!%p296_p3), %vm425_vm1, %vm425_vm1  ;;  %vm351_vm3 = vcmask (!%p296_p3), 261120   ;;  %v350_v10 = vld [vmem:[%s1495_s2] sm:$0xff] (!%p296_p3)  ;;  %v594_v20 = vlaneseq (!%p296_p3)  ;;  %p961_p5 = scmp.ne.s32.totalorder (!%p296_p3), %s1227_s27, 0 }
   0xb   : > { %1031 = vmatprep.subr.bf16.mxu1 (!%p296_p3), %v1237_v0  ;;  %1012 = vmatprep.mubr.msk.f32.mxu1 (!%p296_p3), %vm1238_vm0, %v1239_v1  ;;  %v956_v15 = vld [vmem:[%s1496_s3] ss:$0 sm:$0xff] (!%p296_p3) }
   0xc   : > { %v1355_v21 = vand.u32 (!%p296_p3), 127, %v594_v20 }
  0x11   : > { %s337_s10 = scalar_select %p336_p4, %s1227_s27, 3 }
  0x13   : > { %s978_s11 = sshll.u32 %s337_s10, 5 }
  0x14   : > { %s340_s14 = scalar_lea.vmem %s1494_s1, %s978_s11 }
  0x15   : > { %v346_v3 = vld [vmem:[%s340_s14] sm:$0xff]  ;;  %v347_v4 = vld [vmem:[%s340_s14 + $0x8] sm:$0xff]  ;;  %v348_v5 = vld [vmem:[%s340_s14 + $0x10] sm:$0xff] }
  0x16   : > { %v1026_v6 = vpack.c.bf16 %v347_v4, %v346_v3  ;;  %v349_v7 = vld [vmem:[%s340_s14 + $0x18] sm:$0xff] }
  0x17   : > { %v1029_v8 = vpack.c.bf16 %v349_v7, %v348_v5 }
  0x18   : > { %1027 = vmatpush3.bf16.msra.mxu0 %v1026_v6  ;;  %1034 = vmatpush3.bf16.xpose.msk.msra.mxu1 %vm1324_vm2, %v1026_v6 }
  0x19   : > { %1028 = vmatprep.subr.bf16.mxu0 %v1237_v0  ;;  %1035 = vmatprep.subr.bf16.mxu1 %v1237_v0 }
  0x1c   : > { %1030 = vmatpush3.bf16.msra.mxu0 %v1029_v8 }
  0x1d   : > { %1015 = vmatprep.subr.mxu0 %v1239_v1 }
  0x1f   : > { %1002 = vmatmul.mubr.msk.f32.vlgmr.msra.gmra.mrb[0].mxu0 %vm351_vm3, %v345_v9 }
  0x20   : > { %1038 = vmatpush3.bf16.xpose.msk.msra.mxu1 %vm1324_vm2, %v1029_v8  ;;  %1017 = vmatprep.mubr.msk.f32.mxu0 %vm1238_vm0, %v1239_v1 }
  0x25   : > { %1016 = vmatpush3.xpose.msk.msra.mxu0 %vm351_vm3, %v350_v10 }
  0x26   : > { %1020 = vmatprep.subr.mxu0 %v1239_v1 }
  0xf2   : > { %v421_v11 = vpop.f32.mrb[0].mxu0 }
  0xf3   : > { %v1003_v12 = vpop.f32.mrb[1].mxu0  ;;  %1013 = vmatmul.mubr.msk.f32.vlgmr.msra.gmra.mrb[0].mxu1 %vm425_vm1, %v421_v11 }
 0x1c6   : > { %v1345_v13 = vpop.f32.mrb[0].mxu1 }
 0x1c7   : > { %v1014_v14 = vpop.f32.mrb[1].mxu1  ;;  %1018 = vmatmul.mubr.msk.f32.vlgmr.msra.gmra.mrb[2].mxu0 %vm351_vm3, %v1345_v13  ;;  %696 = vst.msk [vmem:[#allocation2] sm:$0xff] (!%p961_p5), %vm351_vm3, %v1345_v13 }
 0x1c8   : > { %1021 = vmatpush3.msra.mxu0 %v350_v10  ;;  %1022 = vmatprep.mubr.msk.f32.mxu0 %vm1238_vm0, %v1239_v1 }
 0x29a   : > { %v590_v16 = vpop.f32.mrb[2].mxu0 }
 0x29b   : > { %v591_v17 = vadd.f32 %v956_v15, %v590_v16  ;;  %v1019_v18 = vpop.f32.mrb[3].mxu0 }
 0x29d   : > { %v596_v19 = vsel %vm425_vm1, %v591_v17, -inf }
 0x29e   : > { %597 = vmax.xlane.f32.xlu0 %v596_v19 }
 0x32b   : > { %v598_v22 = vpop.xlane.xlu0 %597 }
 0x32c   : > { %vm599_vm4 = vcmp.eq.f32.partialorder %v591_v17, %v598_v22 }
 0x32d   : > { %v600_v23 = vsel %vm599_vm4, %v1355_v21, 8 }
 0x32e   : > { %v601_v24 = vsel %vm425_vm1, %v600_v23, 2147483647 }
 0x32f   : > { %v603_v25 = vshra.s32 %v601_v24, 16  ;;  %v602_v27 = vand.u32 65535, %v601_v24 }
 0x331   : > { %v605_v26 = vcvt.s32.f32 %v603_v25  ;;  %v604_v29 = vcvt.s32.f32 %v602_v27 }
 0x333   : > { %606 = vmin.xlane.f32.xlu0 %v605_v26 }
 0x3c0   : > { %v607_v28 = vpop.xlane.xlu0 %606 }
 0x3c1   : > { %vm608_vm5 = vcmp.eq.f32.partialorder %v605_v26, %v607_v28  ;;  %v613_v31 = vcvt.f32.s32 %v607_v28 }
 0x3c2   : > { %v609_v30 = vsel %vm608_vm5, %v604_v29, inf }
 0x3c3   : > { %610 = vmin.xlane.f32.xlu1 %v609_v30  ;;  %v614_v33 = vshll.u32 %v613_v31, 16 }
 0x450   : > { %v611_v32 = vpop.xlane.xlu1 %610 }
 0x451   : > { %v612_v34 = vcvt.f32.s32 %v611_v32 }
 0x453   : > { %v615_v35 = vadd.s32 %v614_v33, %v612_v34 }
 0x455   : > { %vm616_vm6 = vcmp.eq.s32.totalorder %v1355_v21, %v615_v35 }
 0x456   : > { %v959_v36 = vsel %vm616_vm6, 1.0, %v1239_v1 }
 0x457   : > { %1023 = vmatmul.mubr.msk.f32.vlgmr.msra.gmra.mrb[4].mxu0 %vm425_vm1, %v959_v36 }
 0x525   : > { %695 = sbr.rel (%p961_p5) target bundleno = 1324 (0x52c), region = 40 }
 0x52a   : > { %v688_v37 = vpop.f32.mrb[4].mxu0 }
 0x52b   : > { %v1024_v38 = vpop.f32.mrb[5].mxu0  ;;  %697 = vst.msk [vmem:[#allocation4] sm:$0xff] (!%p961_p5), %vm351_vm3, %v688_v37 }
 0x52c PF: > { %p962_p6 = scmp.ne.s32.totalorder %s1227_s27, 1 }
 0x52d   : > { %s1240_s21 = smov (!%p962_p6), 32   ;;  %vm705_vm7 = vcmask (!%p962_p6), 523520  }
 0x52e   : > { %701 = sbr.rel (%p962_p6) target bundleno = 1446 (0x5a6), region = 44  ;;  %702 = vrot.lane.b32.xlu0 (!%p962_p6), %v1345_v13, %s1240_s21 }
 0x532   : > { %708 = vrot.lane.b32.xlu0 (!%p962_p6), %v688_v37, %s1240_s21 }
 0x5a0   : > { %v703_v39 = vpop.permute.xlu0 %702 }
 0x5a1   : > { %706 = vst.msk [vmem:[#allocation2] sm:$0xff] %vm705_vm7, %v703_v39 }
 0x5a4   : > { %v709_v40 = vpop.permute.xlu0 %708 }
 0x5a5   : > { %711 = vst.msk [vmem:[#allocation4] sm:$0xff] %vm705_vm7, %v709_v40 }
 0x5a6 PF: > { %p963_p7 = scmp.ne.s32.totalorder %s1227_s27, 2 }
 0x5a7   : > { %s1241_s22 = smov (!%p963_p7), 64   ;;  %vm719_vm8 = vcmask (!%p963_p7), 785920  }
 0x5a8   : > { %715 = sbr.rel (%p963_p7) target bundleno = 1568 (0x620), region = 48  ;;  %716 = vrot.lane.b32.xlu0 (!%p963_p7), %v1345_v13, %s1241_s22 }
 0x5ac   : > { %722 = vrot.lane.b32.xlu0 (!%p963_p7), %v688_v37, %s1241_s22 }
 0x61a   : > { %v717_v41 = vpop.permute.xlu0 %716 }
 0x61b   : > { %720 = vst.msk [vmem:[#allocation2] sm:$0xff] %vm719_vm8, %v717_v41 }
 0x61e   : > { %v723_v42 = vpop.permute.xlu0 %722 }
 0x61f   : > { %725 = vst.msk [vmem:[#allocation4] sm:$0xff] %vm719_vm8, %v723_v42 }
 0x620 PF: > { %p964_p8 = scmp.ne.s32.totalorder %s1227_s27, 3 }
 0x621   : > { %s1242_s23 = smov (!%p964_p8), 96   ;;  %vm733_vm9 = vcmask (!%p964_p8), 1048320  }
 0x622   : > { %729 = sbr.rel (%p964_p8) target bundleno = 1690 (0x69a), region = 52  ;;  %730 = vrot.lane.b32.xlu0 (!%p964_p8), %v1345_v13, %s1242_s23 }
 0x626   : > { %736 = vrot.lane.b32.xlu0 (!%p964_p8), %v688_v37, %s1242_s23 }
 0x694   : > { %v731_v43 = vpop.permute.xlu0 %730 }
 0x695   : > { %734 = vst.msk [vmem:[#allocation2] sm:$0xff] %vm733_vm9, %v731_v43 }
 0x698   : > { %v737_v44 = vpop.permute.xlu0 %736 }
 0x699   : > { %739 = vst.msk [vmem:[#allocation4] sm:$0xff] %vm733_vm9, %v737_v44 }
 0x69a PF: > { %v740_v45 = vstv %s1227_s27  ;;  %745 = sbr.rel (%p961_p5) target bundleno = 1697 (0x6a1), region = 56  ;;  %vm746_vm11 = vcmask (!%p961_p5), 31744   ;;  %748 = vst.msk [vmem:[#allocation6] sm:$0xff] (!%p961_p5), %vm351_vm3, %v1345_v13  ;;  %749 = vst.msk [vmem:[#allocation7] sm:$0xff] (!%p961_p5), %vm351_vm3, %v688_v37 }
 0x69b   : > { %vm741_vm10 = vcmp.eq.s32.totalorder %v1355_v21, %v740_v45 }
 0x69c   : > { %v742_v46 = vsel %vm741_vm10, %v615_v35, 0 }
 0x69d   : > { %747 = vst.msk [vmem:[%s1499_s6] sm:$0xff] (!%p961_p5), %vm746_vm11, %v742_v46 }
 0x6a1 PF: > { %p966_p9 = scmp.le.s32.totalorder %s1227_s27, 0 }
 0x6a2   : > { %vm756_vm12 = vcmask (!%p966_p9), 31744   ;;  %v758_v48 = vld [vmem:[#allocation6] sm:$0xff] (!%p966_p9)  ;;  %v761_v49 = vld [vmem:[#allocation7] sm:$0xff] (!%p966_p9) }
 0x6a3   : > { %753 = sbr.rel (%p966_p9) target bundleno = 1706 (0x6aa), region = 60  ;;  %v759_v51 = vadd.f32 (!%p966_p9), %v758_v48, %v1345_v13  ;;  %v762_v52 = vadd.f32 (!%p966_p9), %v761_v49, %v688_v37 }
 0x6a4   : > { %v754_v47 = vld [vmem:[%s1499_s6] sm:$0xff] (!%p966_p9) }
 0x6a5   : > { %v755_v50 = vadd.s32 (!%p966_p9), %v754_v47, %v742_v46  ;;  %760 = vst.msk [vmem:[#allocation6] sm:$0xff] (!%p966_p9), %vm351_vm3, %v759_v51  ;;  %763 = vst.msk [vmem:[#allocation7] sm:$0xff] (!%p966_p9), %vm351_vm3, %v762_v52 }
 0x6a7   : > { %757 = vst.msk [vmem:[%s1499_s6] sm:$0xff] (!%p966_p9), %vm756_vm12, %v755_v50 }
 0x6aa PF: > { %p1396_p10 = scmp.eq.s32.totalorder %s943_s30, 3  ;;  %s1243_s13 = smov [#allocation4]  }
 0x6ab   : > { %s790_s14 = sshll.u32 %s1243_s13, 4  ;;  %s791_s14 = int_to_ptr.vmem [resolvable:$true] %s790_s14 }
 0x6ac   : > { %s1097_s15 = scalar_lea.vmem %s791_s14, 128  ;;  %p1104_p0 = scmp.lt.s32.totalorder %s791_s14, %s791_s14 }
 0x6ad   : > { %p1098_p11 = scmp.ne.s32.totalorder %s791_s14, %s1097_s15  ;;  %p1105_p1 = scmp.lt.s32.totalorder %s1097_s15, %s1097_s15 }
 0x6af   : > { %p1099_p12 = pnand %p1098_p11, %p1396_p10  ;;  %p1106_p2 = por %p1105_p1, %p1104_p0 }
 0x6b1   : > { %p1100_p13 = pneg %p1099_p12 }
 0x6b3   : > { %p1107_p3 = pnand %p1106_p2, %p1100_p13 }
 0x6b5   : > { %1110 = shalt.err (!%p1107_p3)
}
 0x6b6   : > { %s1111_s30 = scalar_lea.hbm %s1498_s5, 128 }
 0x6b7   : > { %p1112_p4 = scmp.ne.s32.totalorder %s1498_s5, %s1111_s30  ;;  %p1117_p7 = scmp.lt.u32.totalorder %s1111_s30, %s1498_s5 }
 0x6b9   : > { %p1113_p5 = pnand %p1112_p4, %p1396_p10 }
 0x6bb   : > { %p1114_p6 = pneg %p1113_p5 }
 0x6bd   : > { %p1119_p8 = pnand %p1117_p7, %p1114_p6 }
 0x6bf   : > { %1122 = shalt.err (!%p1119_p8)
}
 0x6c0   : > { %1042 = dma.vmem_to_hbm [thread:$0]  (%p1396_p10), %s791_s14, 128, %s1498_s5, [#allocation5]  }
 0x6c1   : > { %s1244_s24 = smov [#allocation2]   ;;  %s1245_s26 = smov [#allocation6]  }
 0x6c2   : > { %s777_s25 = sshll.u32 %s1244_s24, 4  ;;  %s806_s10 = sshll.u32 %s1245_s26, 4  ;;  %s778_s25 = int_to_ptr.vmem [resolvable:$true] %s777_s25  ;;  %s807_s10 = int_to_ptr.vmem [resolvable:$true] %s806_s10 }
 0x6c3   : > { %s1123_s11 = scalar_lea.vmem %s778_s25, 128  ;;  %p1130_p13 = scmp.lt.s32.totalorder %s778_s25, %s778_s25 }
 0x6c4   : > { %p1124_p9 = scmp.ne.s32.totalorder %s778_s25, %s1123_s11  ;;  %p1131_p0 = scmp.lt.s32.totalorder %s1123_s11, %s1123_s11 }
 0x6c6   : > { %p1125_p11 = pnand %p1124_p9, %p1396_p10  ;;  %p1132_p1 = por %p1131_p0, %p1130_p13 }
 0x6c8   : > { %p1126_p12 = pneg %p1125_p11 }
 0x6ca   : > { %p1133_p2 = pnand %p1132_p1, %p1126_p12 }
 0x6cc   : > { %1136 = shalt.err (!%p1133_p2)
}
 0x6cd   : > { %s1137_s14 = scalar_lea.hbm %s1497_s4, 128 }
 0x6ce   : > { %p1138_p3 = scmp.ne.s32.totalorder %s1497_s4, %s1137_s14  ;;  %p1143_p6 = scmp.lt.u32.totalorder %s1137_s14, %s1497_s4 }
 0x6d0   : > { %p1139_p4 = pnand %p1138_p3, %p1396_p10 }
 0x6d2   : > { %p1140_p5 = pneg %p1139_p4 }
 0x6d4   : > { %p1145_p7 = pnand %p1143_p6, %p1140_p5 }
 0x6d6   : > { %1148 = shalt.err (!%p1145_p7)
}
 0x6d7   : > { %1040 = dma.vmem_to_hbm [thread:$0]  (%p1396_p10), %s778_s25, 128, %s1497_s4, [#allocation3]  }
 0x6d8   : > { %s1149_s20 = scalar_lea.vmem %s807_s10, 128  ;;  %p1156_p12 = scmp.lt.s32.totalorder %s807_s10, %s807_s10 }
 0x6d9   : > { %p1150_p8 = scmp.ne.s32.totalorder %s807_s10, %s1149_s20  ;;  %p1157_p13 = scmp.lt.s32.totalorder %s1149_s20, %s1149_s20 }
 0x6db   : > { %p1151_p9 = pnand %p1150_p8, %p1396_p10  ;;  %p1158_p0 = por %p1157_p13, %p1156_p12 }
 0x6dd   : > { %p1152_p11 = pneg %p1151_p9 }
 0x6df   : > { %p1159_p1 = pnand %p1158_p0, %p1152_p11 }
 0x6e1   : > { %1162 = shalt.err (!%p1159_p1)
}
 0x6e2   : > { %s1163_s23 = scalar_lea.hbm %s1500_s7, 128 }
 0x6e3   : > { %p1164_p2 = scmp.ne.s32.totalorder %s1500_s7, %s1163_s23  ;;  %p1169_p5 = scmp.lt.u32.totalorder %s1163_s23, %s1500_s7 }
 0x6e5   : > { %p1165_p3 = pnand %p1164_p2, %p1396_p10 }
 0x6e7   : > { %p1166_p4 = pneg %p1165_p3 }
 0x6e9   : > { %p1171_p6 = pnand %p1169_p5, %p1166_p4 }
 0x6eb   : > { %1174 = shalt.err (!%p1171_p6)
}
 0x6ec   : > { %1044 = dma.vmem_to_hbm [thread:$0]  (%p1396_p10), %s807_s10, 128, %s1500_s7, [#allocation5]  }
 0x6ed   : > { %s1246_s14 = smov [#allocation7]  }
 0x6ee   : > { %s819_s15 = sshll.u32 %s1246_s14, 4  ;;  %s820_s15 = int_to_ptr.vmem [resolvable:$true] %s819_s15 }
 0x6ef   : > { %s1175_s16 = scalar_lea.vmem %s820_s15, 128  ;;  %p1182_p11 = scmp.lt.s32.totalorder %s820_s15, %s820_s15 }
 0x6f0   : > { %p1176_p7 = scmp.ne.s32.totalorder %s820_s15, %s1175_s16  ;;  %p1183_p12 = scmp.lt.s32.totalorder %s1175_s16, %s1175_s16 }
 0x6f2   : > { %p1177_p8 = pnand %p1176_p7, %p1396_p10  ;;  %p1184_p13 = por %p1183_p12, %p1182_p11 }
 0x6f4   : > { %p1178_p9 = pneg %p1177_p8 }
 0x6f6   : > { %p1185_p0 = pnand %p1184_p13, %p1178_p9 }
 0x6f8   : > { %1188 = shalt.err (!%p1185_p0)
}
 0x6f9   : > { %s1189_s18 = scalar_lea.hbm %s1501_s8, 128 }
 0x6fa   : > { %p1190_p1 = scmp.ne.s32.totalorder %s1501_s8, %s1189_s18  ;;  %p1195_p4 = scmp.lt.u32.totalorder %s1189_s18, %s1501_s8 }
 0x6fc   : > { %p1191_p2 = pnand %p1190_p1, %p1396_p10 }
 0x6fe   : > { %p1192_p3 = pneg %p1191_p2 }
 0x700   : > { %p1197_p5 = pnand %p1195_p4, %p1192_p3 }
 0x702   : > { %1200 = shalt.err (!%p1197_p5)
}
 0x703   : > { %1046 = dma.vmem_to_hbm [thread:$0]  (%p1396_p10), %s820_s15, 128, %s1501_s8, [#allocation8]  }
 0x704   : > { %1214 = dma.done.wait (%p1396_p10), [#allocation3], 128  }
 0x705   : > { %1216 = vsyncadd (%p1396_p10), [#allocation3], 4294967168 }
 0x706   : > { %1218 = dma.done.wait (%p1396_p10), [#allocation5], 256  }
 0x707   : > { %1220 = vsyncadd (%p1396_p10), [#allocation5], 4294967040 }
 0x708   : > { %1222 = dma.done.wait (%p1396_p10), [#allocation8], 128  }
 0x709   : > { %1224 = vsyncadd (%p1396_p10), [#allocation8], 4294967168 }
 0x70a PF: > { %s22_s29 = sadd.s32 1, %s1235_s29   ;;  %s1505_s27 = smov %s1231_s28 }
 0x70b   : > { %p19_p6 = scmp.ge.s32.totalorder %s22_s29, 6   ;;  %s1506_s28 = smov %s1508_s9 }
 0x70d   :  { %21 = sbr.rel (!%p19_p6) target bundleno = 4 (0x4), region = 130 }
 0x714   :  { %851 = vsyncpa [#allocation3], 1 }
 0x715   :  { %853 = vsyncpa [#allocation3 + $0x1], 1 }
 0x716   :  { %854 = vsyncpa [#allocation5], 1 }
 0x717   :  { %855 = vsyncpa [#allocation8], 1 }

</bundles_post_ra>
